<compile_context>
chip_gen: v7x
topology: tpu7x:2x2x1
jax: 0.10.0
libtpu: 0.0.40
codegen_flags: <defaults>
</compile_context>

<pallas_src>
import functools

import jax
import jax.numpy as jnp
from jax.experimental import pallas as pl
from jax.experimental.pallas import tpu as pltpu

# ----------------------------- model hyper-params -----------------------------
OUTPUT_DIM = 32   # vocab size
EMB_DIM = 16
HID_DIM = 32      # 4*HID_DIM = 128 -> lane-aligned gate block
N_LAYERS = 2
DROPOUT = 0.5     # TODO(synk): dropout is identity here (eval/inference semantics)
BATCH = 2

_VMEM = pl.BlockSpec(memory_space=pltpu.MemorySpace.VMEM)


# ------------------------------- fused Pallas kernel --------------------------------
def _decoder_kernel(tok_ref, h_ref, c_ref, w_ref, b_ref,
                    pred_ref, h_out_ref, c_out_ref):
    """Fused decoder step: (folded) embedding + N_LAYERS LSTM cells + fc_out.

    tok_ref:   [B, 1]  int32   token ids
    h_ref:     [L, B, H] f32   previous hidden state
    c_ref:     [L, B, H] f32   previous cell state
    w_ref:     [2L+1, 32, 128] bf16 weight slab:
                 [0] = E @ W_ih0.T  (embedding folded, g-cols pre-scaled x2)
                 [1] = W_hh0.T      [2] = W_ih1.T      [3] = W_hh1.T
                 [4] = W_fc.T zero-padded to 128 lanes
    b_ref:     [L+1, 1, 128] f32 bias slab ([l] = b_ih_l + b_hh_l, g-cols x2; [L] = fc bias padded)
    """
    B = tok_ref.shape[0]
    H = HID_DIM
    V = OUTPUT_DIM

    # One-hot over the vocab; the embedding table is pre-folded into w_ref[0], so the
    # embedding lookup IS the layer-0 input matmul (single bf16 MXU pass).
    # TODO(synk): dropout (p=0.5) is identity (eval semantics); the embedding fold is
    #             exact only because of that. Out-of-range ids silently give a zero row.
    tok = tok_ref[...]                                                     # [B, 1]
    onehot = (jax.lax.broadcasted_iota(jnp.int32, (B, V), 1)
              == tok).astype(jnp.bfloat16)                                 # [B, V]

    x = onehot
    for layer in range(N_LAYERS):
        h_prev = h_ref[layer]                                              # [B, H] f32
        c_prev = c_ref[layer]                                              # [B, H] f32

        # Two independent bf16 MXU pushes (no lane concat on the recurrence path),
        # f32 accumulation. Gate order i, f, g, o.
        gates = (jnp.dot(x, w_ref[2 * layer],
                         preferred_element_type=jnp.float32)
                 + jnp.dot(h_prev.astype(jnp.bfloat16), w_ref[2 * layer + 1],
                           preferred_element_type=jnp.float32)
                 + b_ref[layer])                                           # [B, 4H] f32

        # Single sigmoid EUP push over the full 128-lane gate block. The g columns of
        # W/b were pre-scaled by 2 at init, so tanh(z_g) = 2*sigmoid(2*z_g) - 1 is a
        # free VPU fixup.
        sg = jax.nn.sigmoid(gates)
        i = sg[:, 0 * H:1 * H]
        f = sg[:, 1 * H:2 * H]
        g = 2.0 * sg[:, 2 * H:3 * H] - 1.0
        o = sg[:, 3 * H:4 * H]

        c_new = f * c_prev + i * g          # cell/hidden elementwise math stays f32
        h_new = o * jnp.tanh(c_new)

        h_out_ref[layer] = h_new
        c_out_ref[layer] = c_new
        x = h_new.astype(jnp.bfloat16)      # inter-layer LSTM dropout: identity (eval)

    # fc_out: weight zero-padded to 128 lanes -> one full-lane MXU pass; only the
    # first V lanes are valid logits.
    logits = (jnp.dot(x, w_ref[2 * N_LAYERS], preferred_element_type=jnp.float32)
              + b_ref[N_LAYERS])                                           # [B, 128]
    pred_ref[...] = logits[:, :V]


# ------------------------------- parameter setup --------------------------------
def init_params(key):
    """Deterministic init matching nn.Embedding / nn.LSTM / nn.Linear shapes.

    Returns (packed_params_for_kernel, raw_params_for_reference).
    """
    H, E, V = HID_DIM, EMB_DIM, OUTPUT_DIM
    assert V == H == 32 and 4 * H == 128, "packing below assumes V == H == 32"

    keys = jax.random.split(key, 4 + 4 * N_LAYERS)
    k_iter = iter(keys)
    raw = {}

    # nn.Embedding(output_dim, emb_dim)
    raw["embedding"] = jax.random.normal(next(k_iter), (V, E), dtype=jnp.float32)

    # nn.LSTM(emb_dim, hid_dim, n_layers)
    bound = 1.0 / (H ** 0.5)
    for layer in range(N_LAYERS):
        in_dim = E if layer == 0 else H
        raw[f"w_ih_{layer}"] = jax.random.uniform(
            next(k_iter), (4 * H, in_dim), minval=-bound, maxval=bound, dtype=jnp.float32)
        raw[f"w_hh_{layer}"] = jax.random.uniform(
            next(k_iter), (4 * H, H), minval=-bound, maxval=bound, dtype=jnp.float32)
        raw[f"b_ih_{layer}"] = jax.random.uniform(
            next(k_iter), (4 * H,), minval=-bound, maxval=bound, dtype=jnp.float32)
        raw[f"b_hh_{layer}"] = jax.random.uniform(
            next(k_iter), (4 * H,), minval=-bound, maxval=bound, dtype=jnp.float32)

    # nn.Linear(hid_dim, output_dim)
    raw["w_fc"] = jax.random.uniform(next(k_iter), (V, H),
                                     minval=-bound, maxval=bound, dtype=jnp.float32)
    raw["b_fc"] = jax.random.uniform(next(k_iter), (V,),
                                     minval=-bound, maxval=bound, dtype=jnp.float32)

    # --- pack for the kernel ---
    # Scale the g-gate columns by 2 so a single sigmoid recovers tanh via 2*s(2x)-1.
    gate_scale = jnp.concatenate(
        [jnp.ones((2 * H,)), jnp.full((H,), 2.0), jnp.ones((H,))]).astype(jnp.float32)

    w_blocks, b_blocks = [], []
    for layer in range(N_LAYERS):
        w_ih_t = raw[f"w_ih_{layer}"].T                              # [in, 4H]
        if layer == 0:
            w_in = raw["embedding"] @ w_ih_t                         # [V, 4H] (embedding folded)
        else:
            w_in = w_ih_t                                            # [H, 4H]
        w_hh_t = raw[f"w_hh_{layer}"].T                              # [H, 4H]
        b = raw[f"b_ih_{layer}"] + raw[f"b_hh_{layer}"]              # [4H]
        w_blocks += [w_in * gate_scale, w_hh_t * gate_scale]
        b_blocks.append(b * gate_scale)

    w_fc_pad = jnp.zeros((H, 4 * H), jnp.float32).at[:, :V].set(raw["w_fc"].T)
    b_fc_pad = jnp.zeros((4 * H,), jnp.float32).at[:V].set(raw["b_fc"])
    w_blocks.append(w_fc_pad)
    b_blocks.append(b_fc_pad)

    params = {
        "w_slab": jnp.stack(w_blocks).astype(jnp.bfloat16),          # [2L+1, 32, 128]
        "b_slab": jnp.stack(b_blocks)[:, None, :].astype(jnp.float32),  # [L+1, 1, 128]
    }
    return params, raw


# ------------------------------- decoder forward --------------------------------
@functools.partial(jax.jit, donate_argnums=(2, 3))
def decoder_forward(params, input_tokens, hidden, cell):
    """input_tokens: [B] int32; hidden, cell: [N_LAYERS, B, H] f32.

    Returns (prediction [B, OUTPUT_DIM], hidden, cell) — one fused, gridless
    pallas_call; hidden/cell are donated + aliased so state updates in place.
    """
    B = input_tokens.shape[0]
    tok2d = input_tokens.astype(jnp.int32).reshape(B, 1)

    out_shapes = (
        jax.ShapeDtypeStruct((B, OUTPUT_DIM), jnp.float32),
        jax.ShapeDtypeStruct((N_LAYERS, B, HID_DIM), jnp.float32),
        jax.ShapeDtypeStruct((N_LAYERS, B, HID_DIM), jnp.float32),
    )

    prediction, new_hidden, new_cell = pl.pallas_call(
        _decoder_kernel,
        out_shape=out_shapes,
        in_specs=[_VMEM] * 5,
        out_specs=(_VMEM, _VMEM, _VMEM),
        # hidden -> output 1, cell -> output 2 (in-place recurrent state update)
        input_output_aliases={1: 1, 2: 2},
    )(tok2d, hidden, cell, params["w_slab"], params["b_slab"])

    return prediction, new_hidden, new_cell


# ------------------------------- pure-JAX reference --------------------------------
def reference_forward(raw, tokens, hidden, cell):
    """f32 reference matching PyTorch eval-mode semantics (gate order i, f, g, o)."""
    H = HID_DIM
    x = raw["embedding"][tokens]                                     # [B, E]
    h_out, c_out = [], []
    for layer in range(N_LAYERS):
        z = (x @ raw[f"w_ih_{layer}"].T + hidden[layer] @ raw[f"w_hh_{layer}"].T
             + raw[f"b_ih_{layer}"] + raw[f"b_hh_{layer}"])
        i = jax.nn.sigmoid(z[:, 0 * H:1 * H])
        f = jax.nn.sigmoid(z[:, 1 * H:2 * H])
        g = jnp.tanh(z[:, 2 * H:3 * H])
        o = jax.nn.sigmoid(z[:, 3 * H:4 * H])
        c_new = f * cell[layer] + i * g
        h_new = o * jnp.tanh(c_new)
        h_out.append(h_new)
        c_out.append(c_new)
        x = h_new
    pred = x @ raw["w_fc"].T + raw["b_fc"]
    return pred, jnp.stack(h_out), jnp.stack(c_out)


# --------------------------------------- main ------------------------------------
if __name__ == "__main__":
    key = jax.random.PRNGKey(0)
    k_params, k_tok, k_h, k_c = jax.random.split(key, 4)

    params, raw = init_params(k_params)

    input_tokens = jax.random.randint(k_tok, (BATCH,), 0, OUTPUT_DIM, dtype=jnp.int32)
    hidden = jax.random.normal(k_h, (N_LAYERS, BATCH, HID_DIM), dtype=jnp.float32)
    cell = jax.random.normal(k_c, (N_LAYERS, BATCH, HID_DIM), dtype=jnp.float32)

    # Reference must run BEFORE the kernel call: hidden/cell buffers are donated to it.
    ref_pred, ref_h, ref_c = reference_forward(raw, input_tokens, hidden, cell)

    prediction, new_hidden, new_cell = decoder_forward(params, input_tokens, hidden, cell)
    jax.block_until_ready((prediction, new_hidden, new_cell))

    assert prediction.shape == (BATCH, OUTPUT_DIM)
    assert new_hidden.shape == (N_LAYERS, BATCH, HID_DIM)
    assert new_cell.shape == (N_LAYERS, BATCH, HID_DIM)
    assert bool(jnp.all(jnp.isfinite(prediction)))
    # bf16 matmul operands (f32 accumulation) vs the pure-f32 reference -> loose tol.
    assert bool(jnp.max(jnp.abs(prediction - ref_pred)) < 5e-2)
    assert bool(jnp.max(jnp.abs(new_hidden - ref_h)) < 5e-2)
    assert bool(jnp.max(jnp.abs(new_cell - ref_c)) < 5e-2)
    print("KERNEL_OK")
</pallas_src>

<mosaic_0001>
module attributes {stable_mosaic.version = 11 : i64} {
  func.func @_decoder_kernel(%arg0: memref<2x1xi32, #tpu.memory_space<vmem>>, %arg1: memref<2x2x32xf32, #tpu.memory_space<vmem>>, %arg2: memref<2x2x32xf32, #tpu.memory_space<vmem>>, %arg3: memref<5x32x128xbf16, #tpu.memory_space<vmem>>, %arg4: memref<3x1x128xf32, #tpu.memory_space<vmem>>, %arg5: memref<2x32xf32, #tpu.memory_space<vmem>>, %arg6: memref<2x2x32xf32, #tpu.memory_space<vmem>>, %arg7: memref<2x2x32xf32, #tpu.memory_space<vmem>>) attributes {dimension_semantics = [], scalar_prefetch = 0 : i64, scratch_operands = 0 : i64, tpu.core_type = #tpu.core_type<tc>} {
    %c0 = arith.constant 0 : index
    %c0_0 = arith.constant 0 : index
    %0 = vector.load %arg0[%c0, %c0_0] : memref<2x1xi32, #tpu.memory_space<vmem>>, vector<2x1xi32>
    %1 = tpu.iota {dimensions = array<i32: 1>} : vector<2x32xi32>
    %2 = vector.broadcast %0 : vector<2x1xi32> to vector<2x32xi32>
    %3 = arith.cmpi eq, %1, %2 : vector<2x32xi32>
    %4 = arith.extui %3 : vector<2x32xi1> to vector<2x32xi32>
    %5 = arith.sitofp %4 : vector<2x32xi32> to vector<2x32xf32>
    %6 = arith.truncf %5 : vector<2x32xf32> to vector<2x32xbf16>
    %c0_1 = arith.constant 0 : index
    %c0_2 = arith.constant 0 : index
    %c0_3 = arith.constant 0 : index
    %7 = vector.load %arg1[%c0_1, %c0_2, %c0_3] : memref<2x2x32xf32, #tpu.memory_space<vmem>>, vector<1x2x32xf32>
    %8 = vector.shape_cast %7 : vector<1x2x32xf32> to vector<2x32xf32>
    %c0_4 = arith.constant 0 : index
    %c0_5 = arith.constant 0 : index
    %c0_6 = arith.constant 0 : index
    %9 = vector.load %arg2[%c0_4, %c0_5, %c0_6] : memref<2x2x32xf32, #tpu.memory_space<vmem>>, vector<1x2x32xf32>
    %10 = vector.shape_cast %9 : vector<1x2x32xf32> to vector<2x32xf32>
    %c0_7 = arith.constant 0 : index
    %c0_8 = arith.constant 0 : index
    %c0_9 = arith.constant 0 : index
    %11 = vector.load %arg3[%c0_7, %c0_8, %c0_9] : memref<5x32x128xbf16, #tpu.memory_space<vmem>>, vector<1x32x128xbf16>
    %12 = vector.shape_cast %11 : vector<1x32x128xbf16> to vector<32x128xbf16>
    %cst = arith.constant dense<0.000000e+00> : vector<2x128xf32>
    %13 = tpu.matmul %6, %12, %cst {dimension_numbers = #tpu.dot_dimension_numbers<[1], [0], [0], [1], [0, 0, 1, 1], [], []>} : vector<2x32xbf16>, vector<32x128xbf16>, vector<2x128xf32> -> vector<2x128xf32>
    %14 = arith.truncf %8 : vector<2x32xf32> to vector<2x32xbf16>
    %c1 = arith.constant 1 : index
    %c0_10 = arith.constant 0 : index
    %c0_11 = arith.constant 0 : index
    %15 = vector.load %arg3[%c1, %c0_10, %c0_11] : memref<5x32x128xbf16, #tpu.memory_space<vmem>>, vector<1x32x128xbf16>
    %16 = vector.shape_cast %15 : vector<1x32x128xbf16> to vector<32x128xbf16>
    %cst_12 = arith.constant dense<0.000000e+00> : vector<2x128xf32>
    %17 = tpu.matmul %14, %16, %cst_12 {dimension_numbers = #tpu.dot_dimension_numbers<[1], [0], [0], [1], [0, 0, 1, 1], [], []>} : vector<2x32xbf16>, vector<32x128xbf16>, vector<2x128xf32> -> vector<2x128xf32>
    %18 = arith.addf %13, %17 : vector<2x128xf32>
    %c0_13 = arith.constant 0 : index
    %c0_14 = arith.constant 0 : index
    %c0_15 = arith.constant 0 : index
    %19 = vector.load %arg4[%c0_13, %c0_14, %c0_15] : memref<3x1x128xf32, #tpu.memory_space<vmem>>, vector<1x1x128xf32>
    %20 = vector.shape_cast %19 : vector<1x1x128xf32> to vector<1x128xf32>
    %21 = vector.broadcast %20 : vector<1x128xf32> to vector<2x128xf32>
    %22 = arith.addf %18, %21 : vector<2x128xf32>
    %23 = arith.negf %22 : vector<2x128xf32>
    %24 = math.exp %23 : vector<2x128xf32>
    %cst_16 = arith.constant 1.000000e+00 : f32
    %25 = vector.broadcast %cst_16 : f32 to vector<2x128xf32>
    %26 = arith.addf %25, %24 : vector<2x128xf32>
    %27 = arith.divf %25, %26 : vector<2x128xf32>
    %28 = vector.extract_strided_slice %27 {offsets = [0, 0], sizes = [2, 32], strides = [1, 1]} : vector<2x128xf32> to vector<2x32xf32>
    %29 = vector.extract_strided_slice %27 {offsets = [0, 32], sizes = [2, 32], strides = [1, 1]} : vector<2x128xf32> to vector<2x32xf32>
    %30 = vector.extract_strided_slice %27 {offsets = [0, 64], sizes = [2, 32], strides = [1, 1]} : vector<2x128xf32> to vector<2x32xf32>
    %cst_17 = arith.constant 2.000000e+00 : f32
    %31 = vector.broadcast %cst_17 : f32 to vector<2x32xf32>
    %32 = arith.mulf %31, %30 : vector<2x32xf32>
    %cst_18 = arith.constant 1.000000e+00 : f32
    %33 = vector.broadcast %cst_18 : f32 to vector<2x32xf32>
    %34 = arith.subf %32, %33 : vector<2x32xf32>
    %35 = vector.extract_strided_slice %27 {offsets = [0, 96], sizes = [2, 32], strides = [1, 1]} : vector<2x128xf32> to vector<2x32xf32>
    %36 = arith.mulf %29, %10 : vector<2x32xf32>
    %37 = arith.mulf %28, %34 : vector<2x32xf32>
    %38 = arith.addf %36, %37 : vector<2x32xf32>
    %39 = math.tanh %38 : vector<2x32xf32>
    %40 = arith.mulf %35, %39 : vector<2x32xf32>
    %c0_19 = arith.constant 0 : index
    %c0_20 = arith.constant 0 : index
    %c0_21 = arith.constant 0 : index
    %41 = vector.load %arg6[%c0_19, %c0_20, %c0_21] : memref<2x2x32xf32, #tpu.memory_space<vmem>>, vector<1x2x32xf32>
    %42 = vector.shape_cast %41 : vector<1x2x32xf32> to vector<2x32xf32>
    %43 = vector.shape_cast %40 : vector<2x32xf32> to vector<1x2x32xf32>
    tpu.vector_store %arg6[%c0_19, %c0_20, %c0_21], %43 {strides = array<i32>} : memref<2x2x32xf32, #tpu.memory_space<vmem>>, vector<1x2x32xf32>,
    %c0_22 = arith.constant 0 : index
    %c0_23 = arith.constant 0 : index
    %c0_24 = arith.constant 0 : index
    %44 = vector.load %arg7[%c0_22, %c0_23, %c0_24] : memref<2x2x32xf32, #tpu.memory_space<vmem>>, vector<1x2x32xf32>
    %45 = vector.shape_cast %44 : vector<1x2x32xf32> to vector<2x32xf32>
    %46 = vector.shape_cast %38 : vector<2x32xf32> to vector<1x2x32xf32>
    tpu.vector_store %arg7[%c0_22, %c0_23, %c0_24], %46 {strides = array<i32>} : memref<2x2x32xf32, #tpu.memory_space<vmem>>, vector<1x2x32xf32>,
    %47 = arith.truncf %40 : vector<2x32xf32> to vector<2x32xbf16>
    %c1_25 = arith.constant 1 : index
    %c0_26 = arith.constant 0 : index
    %c0_27 = arith.constant 0 : index
    %48 = vector.load %arg1[%c1_25, %c0_26, %c0_27] : memref<2x2x32xf32, #tpu.memory_space<vmem>>, vector<1x2x32xf32>
    %49 = vector.shape_cast %48 : vector<1x2x32xf32> to vector<2x32xf32>
    %c1_28 = arith.constant 1 : index
    %c0_29 = arith.constant 0 : index
    %c0_30 = arith.constant 0 : index
    %50 = vector.load %arg2[%c1_28, %c0_29, %c0_30] : memref<2x2x32xf32, #tpu.memory_space<vmem>>, vector<1x2x32xf32>
    %51 = vector.shape_cast %50 : vector<1x2x32xf32> to vector<2x32xf32>
    %c2 = arith.constant 2 : index
    %c0_31 = arith.constant 0 : index
    %c0_32 = arith.constant 0 : index
    %52 = vector.load %arg3[%c2, %c0_31, %c0_32] : memref<5x32x128xbf16, #tpu.memory_space<vmem>>, vector<1x32x128xbf16>
    %53 = vector.shape_cast %52 : vector<1x32x128xbf16> to vector<32x128xbf16>
    %cst_33 = arith.constant dense<0.000000e+00> : vector<2x128xf32>
    %54 = tpu.matmul %47, %53, %cst_33 {dimension_numbers = #tpu.dot_dimension_numbers<[1], [0], [0], [1], [0, 0, 1, 1], [], []>} : vector<2x32xbf16>, vector<32x128xbf16>, vector<2x128xf32> -> vector<2x128xf32>
    %55 = arith.truncf %49 : vector<2x32xf32> to vector<2x32xbf16>
    %c3 = arith.constant 3 : index
    %c0_34 = arith.constant 0 : index
    %c0_35 = arith.constant 0 : index
    %56 = vector.load %arg3[%c3, %c0_34, %c0_35] : memref<5x32x128xbf16, #tpu.memory_space<vmem>>, vector<1x32x128xbf16>
    %57 = vector.shape_cast %56 : vector<1x32x128xbf16> to vector<32x128xbf16>
    %cst_36 = arith.constant dense<0.000000e+00> : vector<2x128xf32>
    %58 = tpu.matmul %55, %57, %cst_36 {dimension_numbers = #tpu.dot_dimension_numbers<[1], [0], [0], [1], [0, 0, 1, 1], [], []>} : vector<2x32xbf16>, vector<32x128xbf16>, vector<2x128xf32> -> vector<2x128xf32>
    %59 = arith.addf %54, %58 : vector<2x128xf32>
    %c1_37 = arith.constant 1 : index
    %c0_38 = arith.constant 0 : index
    %c0_39 = arith.constant 0 : index
    %60 = vector.load %arg4[%c1_37, %c0_38, %c0_39] : memref<3x1x128xf32, #tpu.memory_space<vmem>>, vector<1x1x128xf32>
    %61 = vector.shape_cast %60 : vector<1x1x128xf32> to vector<1x128xf32>
    %62 = vector.broadcast %61 : vector<1x128xf32> to vector<2x128xf32>
    %63 = arith.addf %59, %62 : vector<2x128xf32>
    %64 = arith.negf %63 : vector<2x128xf32>
    %65 = math.exp %64 : vector<2x128xf32>
    %cst_40 = arith.constant 1.000000e+00 : f32
    %66 = vector.broadcast %cst_40 : f32 to vector<2x128xf32>
    %67 = arith.addf %66, %65 : vector<2x128xf32>
    %68 = arith.divf %66, %67 : vector<2x128xf32>
    %69 = vector.extract_strided_slice %68 {offsets = [0, 0], sizes = [2, 32], strides = [1, 1]} : vector<2x128xf32> to vector<2x32xf32>
    %70 = vector.extract_strided_slice %68 {offsets = [0, 32], sizes = [2, 32], strides = [1, 1]} : vector<2x128xf32> to vector<2x32xf32>
    %71 = vector.extract_strided_slice %68 {offsets = [0, 64], sizes = [2, 32], strides = [1, 1]} : vector<2x128xf32> to vector<2x32xf32>
    %cst_41 = arith.constant 2.000000e+00 : f32
    %72 = vector.broadcast %cst_41 : f32 to vector<2x32xf32>
    %73 = arith.mulf %72, %71 : vector<2x32xf32>
    %cst_42 = arith.constant 1.000000e+00 : f32
    %74 = vector.broadcast %cst_42 : f32 to vector<2x32xf32>
    %75 = arith.subf %73, %74 : vector<2x32xf32>
    %76 = vector.extract_strided_slice %68 {offsets = [0, 96], sizes = [2, 32], strides = [1, 1]} : vector<2x128xf32> to vector<2x32xf32>
    %77 = arith.mulf %70, %51 : vector<2x32xf32>
    %78 = arith.mulf %69, %75 : vector<2x32xf32>
    %79 = arith.addf %77, %78 : vector<2x32xf32>
    %80 = math.tanh %79 : vector<2x32xf32>
    %81 = arith.mulf %76, %80 : vector<2x32xf32>
    %c1_43 = arith.constant 1 : index
    %c0_44 = arith.constant 0 : index
    %c0_45 = arith.constant 0 : index
    %82 = vector.load %arg6[%c1_43, %c0_44, %c0_45] : memref<2x2x32xf32, #tpu.memory_space<vmem>>, vector<1x2x32xf32>
    %83 = vector.shape_cast %82 : vector<1x2x32xf32> to vector<2x32xf32>
    %84 = vector.shape_cast %81 : vector<2x32xf32> to vector<1x2x32xf32>
    tpu.vector_store %arg6[%c1_43, %c0_44, %c0_45], %84 {strides = array<i32>} : memref<2x2x32xf32, #tpu.memory_space<vmem>>, vector<1x2x32xf32>,
    %c1_46 = arith.constant 1 : index
    %c0_47 = arith.constant 0 : index
    %c0_48 = arith.constant 0 : index
    %85 = vector.load %arg7[%c1_46, %c0_47, %c0_48] : memref<2x2x32xf32, #tpu.memory_space<vmem>>, vector<1x2x32xf32>
    %86 = vector.shape_cast %85 : vector<1x2x32xf32> to vector<2x32xf32>
    %87 = vector.shape_cast %79 : vector<2x32xf32> to vector<1x2x32xf32>
    tpu.vector_store %arg7[%c1_46, %c0_47, %c0_48], %87 {strides = array<i32>} : memref<2x2x32xf32, #tpu.memory_space<vmem>>, vector<1x2x32xf32>,
    %88 = arith.truncf %81 : vector<2x32xf32> to vector<2x32xbf16>
    %c4 = arith.constant 4 : index
    %c0_49 = arith.constant 0 : index
    %c0_50 = arith.constant 0 : index
    %89 = vector.load %arg3[%c4, %c0_49, %c0_50] : memref<5x32x128xbf16, #tpu.memory_space<vmem>>, vector<1x32x128xbf16>
    %90 = vector.shape_cast %89 : vector<1x32x128xbf16> to vector<32x128xbf16>
    %cst_51 = arith.constant dense<0.000000e+00> : vector<2x128xf32>
    %91 = tpu.matmul %88, %90, %cst_51 {dimension_numbers = #tpu.dot_dimension_numbers<[1], [0], [0], [1], [0, 0, 1, 1], [], []>} : vector<2x32xbf16>, vector<32x128xbf16>, vector<2x128xf32> -> vector<2x128xf32>
    %c2_52 = arith.constant 2 : index
    %c0_53 = arith.constant 0 : index
    %c0_54 = arith.constant 0 : index
    %92 = vector.load %arg4[%c2_52, %c0_53, %c0_54] : memref<3x1x128xf32, #tpu.memory_space<vmem>>, vector<1x1x128xf32>
    %93 = vector.shape_cast %92 : vector<1x1x128xf32> to vector<1x128xf32>
    %94 = vector.broadcast %93 : vector<1x128xf32> to vector<2x128xf32>
    %95 = arith.addf %91, %94 : vector<2x128xf32>
    %96 = vector.extract_strided_slice %95 {offsets = [0, 0], sizes = [2, 32], strides = [1, 1]} : vector<2x128xf32> to vector<2x32xf32>
    %c0_55 = arith.constant 0 : index
    %c0_56 = arith.constant 0 : index
    %97 = vector.load %arg5[%c0_55, %c0_56] : memref<2x32xf32, #tpu.memory_space<vmem>>, vector<2x32xf32>
    tpu.vector_store %arg5[%c0_55, %c0_56], %96 {strides = array<i32>} : memref<2x32xf32, #tpu.memory_space<vmem>>, vector<2x32xf32>,
    return
  }
}

</mosaic_0001>

<bundles_post_ra>
// kernel: decoder_forward.1
= control target key start
LH: loop header
LB: loop body
LE: loop exit
PB: predicated region body
PF: predicated region fallthrough
CT: control target
= control target key end

     0   :  { %13 = vsyncpa [#allocation3], 0  ;;  %s1010_s0 = inlined_call_operand.vmem [shape: s32[2,1], index: 0, kind: input, shape index: {}]   ;;  %s1011_s1 = inlined_call_operand.hbm [shape: f32[2,2,32], index: 1, kind: input, shape index: {}, may-alias: {1,6}]   ;;  %s1012_s2 = inlined_call_operand.hbm [shape: f32[2,2,32], index: 2, kind: input, shape index: {}, may-alias: {2,7}]   ;;  %s1013_s3 = inlined_call_operand.hbm [shape: bf16[5,32,128], index: 3, kind: input, shape index: {}]   ;;  %s1014_s4 = inlined_call_operand.vmem [shape: f32[3,1,128], index: 4, kind: input, shape index: {}]   ;;  %s1015_s5 = inlined_call_operand.hbm [shape: f32[2,32], index: 5, kind: output, shape index: {0}]   ;;  %s1016_s6 = inlined_call_operand.hbm [shape: f32[2,2,32], index: 6, kind: output, shape index: {1}, may-alias: {1,6}]   ;;  %s1017_s7 = inlined_call_operand.hbm [shape: f32[2,2,32], index: 7, kind: output, shape index: {2}, may-alias: {2,7}]  }
   0x1   :  { %14 = vsyncpa [#allocation6], 0 }
   0x2   :  { %15 = vsyncpa [#allocation4], 0 }
   0x3   :  { %16 = vsyncpa [#allocation10], 0  ;;  %s804_s24 = smov [#allocation5]   ;;  %s805_s26 = smov [#allocation2]  }
   0x4   :  { %s36_s25 = sshll.u32 %s804_s24, 4  ;;  %s24_s27 = sshll.u32 %s805_s26, 4  ;;  %s37_s25 = int_to_ptr.vmem [resolvable:$true] %s36_s25  ;;  %s858_s27 = int_to_ptr.vmem [resolvable:$true] %s24_s27 }
   0x5   :  { %s664_s30 = scalar_lea.hbm %s1012_s2, 64 }
   0x6   :  { %p665_p0 = scmp.ne.s32.totalorder %s1012_s2, %s664_s30  ;;  %p668_p1 = scmp.lt.u32.totalorder %s664_s30, %s1012_s2 }
   0x8   :  { %p670_p2 = pnand %p668_p1, %p665_p0 }
   0xa   :  { %673 = shalt.err (!%p670_p2)
}
   0xb   :  { %s674_s12 = scalar_lea.vmem %s37_s25, 64  ;;  %p679_p4 = scmp.lt.s32.totalorder %s37_s25, %s37_s25 }
   0xc   :  { %p675_p3 = scmp.ne.s32.totalorder %s37_s25, %s674_s12  ;;  %p680_p5 = scmp.lt.s32.totalorder %s674_s12, %s674_s12 }
   0xe   :  { %p681_p6 = por %p680_p5, %p679_p4 }
  0x10   :  { %p682_p7 = pnand %p681_p6, %p675_p3 }
  0x12   :  { %685 = shalt.err (!%p682_p7)
}
  0x13   :  { %s806_s13 = smov 32   ;;  %s807_s14 = smov 2  }
  0x14   :  { %42 = dma.hbm_to_vmem [thread:$0]  %s1012_s2, 64, %s37_s25, [#allocation6], %s806_s13, %s806_s13, %s807_s14  }
  0x15   :  { %s686_s19 = scalar_lea.hbm %s1011_s1, 64 }
  0x16   :  { %p687_p8 = scmp.ne.s32.totalorder %s1011_s1, %s686_s19  ;;  %p690_p9 = scmp.lt.u32.totalorder %s686_s19, %s1011_s1 }
  0x18   :  { %p692_p10 = pnand %p690_p9, %p687_p8 }
  0x1a   :  { %695 = shalt.err (!%p692_p10)
}
  0x1b   :  { %s696_s24 = scalar_lea.vmem %s858_s27, 64  ;;  %p701_p12 = scmp.lt.s32.totalorder %s858_s27, %s858_s27 }
  0x1c   :  { %p697_p11 = scmp.ne.s32.totalorder %s858_s27, %s696_s24  ;;  %p702_p13 = scmp.lt.s32.totalorder %s696_s24, %s696_s24 }
  0x1e   :  { %p703_p0 = por %p702_p13, %p701_p12 }
  0x20   :  { %p704_p1 = pnand %p703_p0, %p697_p11 }
  0x22   :  { %707 = shalt.err (!%p704_p1)
}
  0x23   :  { %30 = dma.hbm_to_vmem [thread:$0]  %s1011_s1, 64, %s858_s27, [#allocation3], %s806_s13, %s806_s13, %s807_s14  }
  0x24   :  { %s808_s26 = smov [#allocation7]   ;;  %s708_s8 = scalar_lea.hbm %s1013_s3, 1280 }
  0x25   :  { %s48_s28 = sshll.u32 %s808_s26, 4  ;;  %p709_p2 = scmp.ne.s32.totalorder %s1013_s3, %s708_s8  ;;  %s49_s28 = int_to_ptr.vmem [resolvable:$true] %s48_s28 }
  0x26   :  { %p712_p3 = scmp.lt.u32.totalorder %s708_s8, %s1013_s3 }
  0x28   :  { %p714_p4 = pnand %p712_p3, %p709_p2 }
  0x2a   :  { %717 = shalt.err (!%p714_p4)
}
  0x2b   :  { %s718_s15 = scalar_lea.vmem %s49_s28, 1280  ;;  %p723_p6 = scmp.lt.s32.totalorder %s49_s28, %s49_s28 }
  0x2c   :  { %p719_p5 = scmp.ne.s32.totalorder %s49_s28, %s718_s15  ;;  %p724_p7 = scmp.lt.s32.totalorder %s718_s15, %s718_s15 }
  0x2e   :  { %p725_p8 = por %p724_p7, %p723_p6 }
  0x30   :  { %p726_p9 = pnand %p725_p8, %p719_p5 }
  0x32   :  { %729 = shalt.err (!%p726_p9)
}
  0x33   :  { %s809_s1 = smov 64   ;;  %s810_s27 = smov 4  }
  0x34   :  { %54 = dma.hbm_to_vmem [thread:$0]  %s1013_s3, 1280, %s49_s28, [#allocation6], %s809_s1, %s809_s1, %s810_s27  }
  0x35   :  { %796 = dma.done.wait [#allocation3], 64  }
  0x36   :  { %797 = vsyncadd [#allocation3], 4294967232 }
  0x37   :  { %798 = dma.done.wait [#allocation6], 1344  }
  0x38   :  { %799 = vsyncadd [#allocation6], 4294965952  ;;  %v811_v0 = vmov 0   ;;  %v812_v1 = vmov 0.0   ;;  %v67_v2 = vld [vmem:[%s1010_s0] sm:$0x3]  ;;  %v68_v10 = vlaneseq }
  0x39   :  { %641 = vset.pattern.permute.xlu0 %v811_v0  ;;  %587 = vmatprep.subr.bf16.mxu0 %v812_v1  ;;  %v642_v3 = vld [vmem:[#allocation7 + $0x10] sm:$0xff]   ;;  %v643_v4 = vld [vmem:[#allocation7] sm:$0xff]   ;;  %vm813_vm0 = vmmov 0   ;;  %v644_v5 = vld [vmem:[#allocation7 + $0x18] sm:$0xff]   ;;  %vm101_vm1 = vcmask 261120   ;;  %s814_s22 = smov 96  }
  0x3a   :  { %595 = vmatprep.subr.bf16.mxu1 %v812_v1  ;;  %71 = vperm.xlu0 %641, %v67_v2   ;;  %v77_v6 = vld [vmem:[#allocation2] sm:$0x3]  ;;  %v645_v7 = vld [vmem:[#allocation7 + $0x8] sm:$0xff]   ;;  %v78_v8 = vld [vmem:[#allocation5] sm:$0x3]  ;;  %v69_v11 = vand.u32 127, %v68_v10 }
  0x3b   :  { %591 = vmatprep.mubr.msk.bf16.mxu0 %vm813_vm0, %v812_v1  ;;  %599 = vmatprep.mubr.msk.bf16.mxu1 %vm813_vm0, %v812_v1  ;;  %v83_v9 = vpack.c.bf16 %v77_v6, %v77_v6  ;;  %v554_v20 = vld [vmem:[%s1014_s4] ss:$0 sm:$0xff]  ;;  %v646_v38 = vld [vmem:[#allocation7 + $0x30] sm:$0xff]   ;;  %v647_v39 = vld [vmem:[#allocation7 + $0x20] sm:$0xff]   ;;  %vm241_vm3 = vcmask 254976   ;;  %s815_s23 = smov [#allocation9]  }
  0x3c   :  { %588 = vmatpush3.bf16.msra.mxu0 %v642_v3  ;;  %596 = vmatpush3.bf16.msra.mxu1 %v643_v4  ;;  %v648_v40 = vld [vmem:[#allocation7 + $0x38] sm:$0xff]   ;;  %v649_v41 = vld [vmem:[#allocation7 + $0x28] sm:$0xff]   ;;  %s515_s24 = sshll.u32 %s815_s23, 4  ;;  %s516_s24 = int_to_ptr.vmem [resolvable:$true] %s515_s24 }
  0x3d   :  { %589 = vmatprep.subr.bf16.mxu0 %v812_v1  ;;  %597 = vmatprep.subr.bf16.mxu1 %v812_v1  ;;  %v250_v42 = vld [vmem:[#allocation2 + $0x2] sm:$0x3]  ;;  %v252_v48 = vld [vmem:[#allocation5 + $0x2] sm:$0x3]  ;;  %v564_v55 = vld [vmem:[%s1014_s4 + $0x1] ss:$0 sm:$0xff]  ;;  %p735_p11 = scmp.lt.s32.totalorder %s516_s24, %s516_s24 }
  0x3e   :  { %217 = vrot.lane.b32.xlu1 %v78_v8, %s806_s13  ;;  %v258_v43 = vpack.c.bf16 %v250_v42, %v250_v42  ;;  %s730_s2 = scalar_lea.vmem %s516_s24, 64 }
  0x3f   :  { %p731_p10 = scmp.ne.s32.totalorder %s516_s24, %s730_s2  ;;  %p736_p12 = scmp.lt.s32.totalorder %s730_s2, %s730_s2 }
  0x40   :  { %590 = vmatpush3.bf16.msra.mxu0 %v644_v5  ;;  %598 = vmatpush3.bf16.msra.mxu1 %v645_v7 }
  0x41   :  { %603 = vmatprep.subr.bf16.mxu0 %v812_v1  ;;  %611 = vmatprep.subr.bf16.mxu1 %v812_v1  ;;  %p737_p13 = por %p736_p12, %p735_p11 }
  0x43   :  { %592 = vmatmul.mubr.msk.bf16.vlgmr.msra.gmra.mrb[0].mxu0 %vm101_vm1, %v83_v9  ;;  %p738_p0 = pnand %p737_p13, %p731_p10 }
  0x44   :  { %607 = vmatprep.mubr.msk.bf16.mxu0 %vm813_vm0, %v812_v1  ;;  %604 = vmatpush3.bf16.msra.mxu0 %v646_v38 }
  0x45   :  { %605 = vmatprep.subr.bf16.mxu0 %v812_v1 }
  0x48   :  { %606 = vmatpush3.bf16.msra.mxu0 %v648_v40 }
  0x49   :  { %619 = vmatprep.subr.bf16.mxu0 %v812_v1 }
  0x4b   :  { %608 = vmatmul.mubr.msk.bf16.vlgmr.msra.gmra.mrb[4].mxu0 %vm101_vm1, %v258_v43 }
  0x4c   :  { %623 = vmatprep.mubr.msk.bf16.mxu0 %vm813_vm0, %v812_v1 }
  0xb0   :  { %v218_v34 = vpop.permute.xlu1 %217 }
  0xb9   :  { %v72_v12 = vpop.permute.xlu0 %71 }
  0xba   :  { %vm73_vm2 = vcmp.eq.s32.totalorder %v69_v11, %v72_v12  ;;  %v650_v11 = vld [vmem:[#allocation7 + $0x40] sm:$0xff]   ;;  %v651_v12 = vld [vmem:[#allocation7 + $0x48] sm:$0xff]  }
  0xbb   :  { %v547_v13 = vsel %vm73_vm2, 1.0, %v812_v1  ;;  %620 = vmatpush3.bf16.msra.mxu0 %v650_v11 }
  0xbc   :  { %v76_v14 = vpack.c.bf16 %v547_v13, %v547_v13  ;;  %621 = vmatprep.subr.bf16.mxu0 %v812_v1 }
  0xbe   :  { %600 = vmatmul.mubr.msk.bf16.vlgmr.msra.gmra.mrb[0].mxu1 %vm101_vm1, %v76_v14 }
  0xbf   :  { %615 = vmatprep.mubr.msk.bf16.mxu1 %vm813_vm0, %v812_v1  ;;  %612 = vmatpush3.bf16.msra.mxu1 %v647_v39 }
  0xc0   :  { %613 = vmatprep.subr.bf16.mxu1 %v812_v1  ;;  %622 = vmatpush3.bf16.msra.mxu0 %v651_v12 }
  0xc3   :  { %614 = vmatpush3.bf16.msra.mxu1 %v649_v41 }
 0x116   :  { %v139_v15 = vpop.f32.mrb[0].mxu0 }
 0x117   :  { %v593_v16 = vpop.f32.mrb[1].mxu0 }
 0x118   :  { %v142_v17 = vpop.f32.mrb[2].mxu0 }
 0x119   :  { %v594_v18 = vpop.f32.mrb[3].mxu0 }
 0x11e   :  { %v313_v49 = vpop.f32.mrb[4].mxu0 }
 0x11f   :  { %v609_v50 = vpop.f32.mrb[5].mxu0 }
 0x120   :  { %v316_v51 = vpop.f32.mrb[6].mxu0 }
 0x121   :  { %v610_v52 = vpop.f32.mrb[7].mxu0 }
 0x191   :  { %v194_v19 = vpop.f32.mrb[0].mxu1 }
 0x192   :  { %v195_v21 = vadd.f32 %v194_v19, %v139_v15  ;;  %v601_v22 = vpop.f32.mrb[1].mxu1 }
 0x193   :  { %v197_v23 = vpop.f32.mrb[2].mxu1 }
 0x194   :  { %v207_v24 = vadd.f32 %v554_v20, %v195_v21  ;;  %v602_v25 = vpop.f32.mrb[3].mxu1 }
 0x196   :  { %v555_v26 = vmul.f32 -1.442695, %v207_v24 }
 0x198   :  { %652 = vpow2.f32 %v555_v26 }
 0x1a2   :  { %v653_v27 = vpop.eup %652 }
 0x1a3   :  { %v211_v28 = vadd.f32 1.0, %v653_v27 }
 0x1a5   :  { %654 = vrcp.f32 %v211_v28 }
 0x1af   :  { %v655_v29 = vpop.eup %654 }
 0x1b0   :  { %v214_v30 = vmul.f32 2.0, %v655_v29  ;;  %v220_v35 = vmul.f32 %v655_v29, %v218_v34 }
 0x1b2   :  { %v556_v31 = vadd.f32 -1.0, %v214_v30 }
 0x1b4   :  { %222 = vrot.lane.b32.xlu0 %v556_v31, %s809_s1 }
 0x226   :  { %v223_v32 = vpop.permute.xlu0 %222 }
 0x227   :  { %v225_v33 = vmul.f32 %v655_v29, %v223_v32 }
 0x229   :  { %227 = vrot.lane.b32.xlu1 %v225_v33, %s806_s13 }
 0x29b   :  { %v228_v36 = vpop.permute.xlu1 %227 }
 0x29c   :  { %v935_v37 = vadd.f32 %v228_v36, %v220_v35 }
 0x29e   :  { %656 = vtanh.f32 %v935_v37 }
 0x2a8   :  { %v657_v44 = vpop.eup %656 }
 0x2a9   :  { %233 = vrot.lane.b32.xlu0 %v657_v44, %s809_s1 }
 0x31b   :  { %v234_v45 = vpop.permute.xlu0 %233 }
 0x31c   :  { %v236_v46 = vmul.f32 %v655_v29, %v234_v45 }
 0x31e   :  { %v248_v47 = vpack.c.bf16 %v236_v46, %v236_v46 }
 0x320   :  { %320 = vrot.lane.b32.xlu1 %v248_v47, %s806_s13 }
 0x324   :  { %395 = vrot.lane.b32.xlu1 %v252_v48, %s806_s13 }
 0x392   :  { %v321_v53 = vpop.permute.xlu1 %320 }
 0x393   :  { %616 = vmatmul.mubr.msk.bf16.vlgmr.msra.gmra.mrb[4].mxu1 %vm101_vm1, %v321_v53 }
 0x396   :  { %v396_v6 = vpop.permute.xlu1 %395 }
 0x466   :  { %v371_v54 = vpop.f32.mrb[4].mxu1 }
 0x467   :  { %v372_v56 = vadd.f32 %v371_v54, %v313_v49  ;;  %v617_v57 = vpop.f32.mrb[5].mxu1 }
 0x468   :  { %v374_v58 = vpop.f32.mrb[6].mxu1 }
 0x469   :  { %v385_v59 = vadd.f32 %v564_v55, %v372_v56  ;;  %v618_v60 = vpop.f32.mrb[7].mxu1 }
 0x46b   :  { %v565_v61 = vmul.f32 -1.442695, %v385_v59 }
 0x46d   :  { %658 = vpow2.f32 %v565_v61 }
 0x477   :  { %v659_v62 = vpop.eup %658 }
 0x478   :  { %v389_v63 = vadd.f32 1.0, %v659_v62 }
 0x47a   :  { %660 = vrcp.f32 %v389_v63 }
 0x484   :  { %v661_v0 = vpop.eup %660 }
 0x485   :  { %v392_v2 = vmul.f32 2.0, %v661_v0  ;;  %v398_v7 = vmul.f32 %v661_v0, %v396_v6 }
 0x487   :  { %v566_v3 = vadd.f32 -1.0, %v392_v2 }
 0x489   :  { %400 = vrot.lane.b32.xlu0 %v566_v3, %s809_s1 }
 0x4fb   :  { %v401_v4 = vpop.permute.xlu0 %400 }
 0x4fc   :  { %v403_v5 = vmul.f32 %v661_v0, %v401_v4 }
 0x4fe   :  { %405 = vrot.lane.b32.xlu0 %v403_v5, %s806_s13 }
 0x570   :  { %v406_v8 = vpop.permute.xlu0 %405 }
 0x571   :  { %v408_v9 = vadd.f32 %v406_v8, %v398_v7 }
 0x573   :  { %662 = vtanh.f32 %v408_v9 }
 0x57d   :  { %v663_v10 = vpop.eup %662 }
 0x57e   :  { %411 = vrot.lane.b32.xlu1 %v663_v10, %s809_s1 }
 0x582   :  { %238 = vrot.lane.b32.xlu1 %v236_v46, %s806_s13 }
 0x586   :  { %244 = vrot.lane.b32.xlu1 %v935_v37, %s814_s22 }
 0x5f0   :  { %v412_v13 = vpop.permute.xlu1 %411 }
 0x5f1   :  { %v414_v14 = vmul.f32 %v661_v0, %v412_v13 }
 0x5f3   :  { %v427_v15 = vpack.c.bf16 %v414_v14, %v414_v14 }
 0x5f4   :  { %v239_v16 = vpop.permute.xlu1 %238 }
 0x5f5   :  { %242 = vst.msk [vmem:[#allocation9] sm:$0x3] %vm241_vm3, %v239_v16  ;;  %442 = vrot.lane.b32.xlu0 %v427_v15, %s806_s13 }
 0x5f8   :  { %v245_v17 = vpop.permute.xlu1 %244 }
 0x5f9   :  { %247 = vst.msk [vmem:[#allocation11] sm:$0x3] %vm241_vm3, %v245_v17  ;;  %416 = vrot.lane.b32.xlu0 %v414_v14, %s806_s13 }
 0x5fd   :  { %422 = vrot.lane.b32.xlu0 %v408_v9, %s814_s22 }
 0x667   :  { %v443_v1 = vpop.permute.xlu0 %442 }
 0x668   :  { %624 = vmatmul.mubr.msk.bf16.vlgmr.msra.gmra.mrb[8].mxu0 %vm101_vm1, %v443_v1 }
 0x66b   :  { %v417_v18 = vpop.permute.xlu0 %416 }
 0x66c   :  { %420 = vst.msk [vmem:[#allocation9 + $0x2] sm:$0x3] %vm241_vm3, %v417_v18 }
 0x66f   :  { %v423_v19 = vpop.permute.xlu0 %422 }
 0x670   :  { %426 = vst.msk [vmem:[#allocation11 + $0x2] sm:$0x3] %vm241_vm3, %v423_v19 }
 0x671   :  { %741 = shalt.err (!%p738_p0)
}
 0x672   :  { %s742_s28 = scalar_lea.hbm %s1016_s6, 64 }
 0x673   :  { %p743_p1 = scmp.ne.s32.totalorder %s1016_s6, %s742_s28  ;;  %p746_p2 = scmp.lt.u32.totalorder %s742_s28, %s1016_s6 }
 0x675   :  { %p748_p3 = pnand %p746_p2, %p743_p1 }
 0x677   :  { %751 = shalt.err (!%p748_p3)
}
 0x678   :  { %521 = dma.vmem_to_hbm [thread:$0]  %s516_s24, 64, %s1016_s6, [#allocation10], %s806_s13, %s806_s13, %s807_s14  }
 0x679   :  { %s816_s12 = smov [#allocation11]  }
 0x67a   :  { %s527_s15 = sshll.u32 %s816_s12, 4  ;;  %s528_s15 = int_to_ptr.vmem [resolvable:$true] %s527_s15 }
 0x67b   :  { %s752_s1 = scalar_lea.vmem %s528_s15, 64  ;;  %p757_p5 = scmp.lt.s32.totalorder %s528_s15, %s528_s15 }
 0x67c   :  { %p753_p4 = scmp.ne.s32.totalorder %s528_s15, %s752_s1  ;;  %p758_p6 = scmp.lt.s32.totalorder %s752_s1, %s752_s1 }
 0x67e   :  { %p759_p7 = por %p758_p6, %p757_p5 }
 0x680   :  { %p760_p8 = pnand %p759_p7, %p753_p4 }
 0x682   :  { %763 = shalt.err (!%p760_p8)
}
 0x683   :  { %s764_s17 = scalar_lea.hbm %s1017_s7, 64 }
 0x684   :  { %p765_p9 = scmp.ne.s32.totalorder %s1017_s7, %s764_s17  ;;  %p768_p10 = scmp.lt.u32.totalorder %s764_s17, %s1017_s7 }
 0x686   :  { %p770_p11 = pnand %p768_p10, %p765_p9 }
 0x688   :  { %773 = shalt.err (!%p770_p11)
}
 0x689   :  { %533 = dma.vmem_to_hbm [thread:$0]  %s528_s15, 64, %s1017_s7, [#allocation10], %s806_s13, %s806_s13, %s807_s14  }
 0x68a   :  { %v568_v20 = vld [vmem:[%s1014_s4 + $0x2] ss:$0 sm:$0xff]  ;;  %s817_s23 = smov [#allocation8]  }
 0x68b   :  { %s506_s24 = sshll.u32 %s817_s23, 4  ;;  %s507_s24 = int_to_ptr.vmem [resolvable:$true] %s506_s24 }
 0x68c   :  { %s774_s2 = scalar_lea.vmem %s507_s24, 32  ;;  %p779_p13 = scmp.lt.s32.totalorder %s507_s24, %s507_s24 }
 0x68d   :  { %p775_p12 = scmp.ne.s32.totalorder %s507_s24, %s774_s2  ;;  %p780_p0 = scmp.lt.s32.totalorder %s774_s2, %s774_s2 }
 0x68f   :  { %p781_p1 = por %p780_p0, %p779_p13 }
 0x691   :  { %p782_p2 = pnand %p781_p1, %p775_p12 }
 0x73b   :  { %v493_v21 = vpop.f32.mrb[8].mxu0 }
 0x73c   :  { %v494_v22 = vadd.f32 %v568_v20, %v493_v21  ;;  %v625_v23 = vpop.f32.mrb[9].mxu0 }
 0x73d   :  { %v496_v24 = vpop.f32.mrb[10].mxu0 }
 0x73e   :  { %499 = vst.msk [vmem:[#allocation8] sm:$0x3] %vm241_vm3, %v494_v22  ;;  %v626_v25 = vpop.f32.mrb[11].mxu0 }
 0x73f   :  { %785 = shalt.err (!%p782_p2)
}
 0x740   :  { %s786_s4 = scalar_lea.hbm %s1015_s5, 32 }
 0x741   :  { %p787_p3 = scmp.ne.s32.totalorder %s1015_s5, %s786_s4  ;;  %p790_p4 = scmp.lt.u32.totalorder %s786_s4, %s1015_s5 }
 0x743   :  { %p792_p5 = pnand %p790_p4, %p787_p3 }
 0x745   :  { %795 = shalt.err (!%p792_p5)
}
 0x746   :  { %509 = dma.vmem_to_hbm [thread:$0]  %s507_s24, 32, %s1015_s5, [#allocation4]  }
 0x747   :  { %800 = dma.done.wait [#allocation4], 32  }
 0x748   :  { %801 = vsyncadd [#allocation4], 4294967264 }
 0x749   :  { %802 = dma.done.wait [#allocation10], 128  }
 0x74a   :  { %803 = vsyncadd [#allocation10], 4294967168 }
 0x74b   :  { %543 = vsyncpa [#allocation3], 1 }
 0x74c   :  { %544 = vsyncpa [#allocation6], 1 }
 0x74d   :  { %545 = vsyncpa [#allocation4], 1 }
 0x74e   :  { %546 = vsyncpa [#allocation10], 1 }

</bundles_post_ra>
